<compile_context>
chip_gen: v7x
topology: tpu7x:2x2x1
jax: 0.10.0
libtpu: 0.0.40
codegen_flags: <defaults>
</compile_context>

<pallas_src>
import jax
import jax.numpy as jnp
from jax.experimental import pallas as pl
from jax.experimental.pallas import tpu as pltpu


def _bcast_mul_kernel(scale_ref, x_ref, o_ref):
    # scale_ref: (Cb, 1)      per-channel scalar tile
    # x_ref:     (Cb, H*W)    feature slab tile
    # o_ref:     (Cb, H*W)
    o_ref[...] = x_ref[...] * scale_ref[...]


def _pick_channel_block(c):
    """Pick a channel block giving 2-3 pipeline steps, multiple of 8 sublanes."""
    for steps in (3, 2):
        if c % steps == 0 and (c // steps) % 8 == 0:
            return c // steps
    return c  # fall back to a single full-size step


def broadcast_mul(x68, x63):
    """x68: (N, C, 1, 1), x63: (N, C, H, W) -> (N, C, H, W)  (N must be 1)."""
    n, c, h, w = x63.shape
    assert x68.shape == (n, c, 1, 1) and n == 1

    hw = h * w
    cb = _pick_channel_block(c)
    n_steps = c // cb

    scale2d = x68.reshape(c, 1)
    x2d = x63.reshape(c, hw)

    out2d = pl.pallas_call(
        _bcast_mul_kernel,
        out_shape=jax.ShapeDtypeStruct((c, hw), x63.dtype),
        grid=(n_steps,),
        in_specs=[
            pl.BlockSpec((cb, 1), lambda i: (i, 0)),    # per-channel scale tile
            pl.BlockSpec((cb, hw), lambda i: (i, 0)),   # feature slab tile
        ],
        out_specs=pl.BlockSpec((cb, hw), lambda i: (i, 0)),
        compiler_params=pltpu.CompilerParams(
            dimension_semantics=("parallel",),
        ),
    )(scale2d, x2d)

    return out2d.reshape(n, c, h, w)


if __name__ == "__main__":
    key = jax.random.PRNGKey(0)
    k1, k2 = jax.random.split(key)
    # Shapes implied by the module's forward.
    x63 = jax.random.normal(k1, (1, 120, 28, 28), dtype=jnp.float32)
    x68 = jax.random.normal(k2, (1, 120, 1, 1), dtype=jnp.float32)

    out = broadcast_mul(x68, x63)
    jax.block_until_ready(out)

    # Correctness check against plain-JAX broadcasting semantics.
    ref = x68 * x63
    assert out.shape == (1, 120, 28, 28)
    assert jnp.allclose(out, ref, atol=1e-6, rtol=1e-6)

    print("KERNEL_OK")
</pallas_src>

<mosaic_0001>
module attributes {stable_mosaic.version = 11 : i64} {
  func.func @_bcast_mul_kernel(%arg0: i32, %arg1: memref<40x1xf32, #tpu.memory_space<vmem>>, %arg2: memref<40x784xf32, #tpu.memory_space<vmem>>, %arg3: memref<40x784xf32, #tpu.memory_space<vmem>>) attributes {dimension_semantics = [#tpu.dimension_semantics<parallel>], iteration_bounds = array<i64: 3>, scalar_prefetch = 0 : i64, scratch_operands = 0 : i64, tpu.core_type = #tpu.core_type<tc>, window_params = [{transform_indices = @transform_0, window_bounds = array<i64: 40, 1>}, {transform_indices = @transform_1, window_bounds = array<i64: 40, 784>}, {transform_indices = @transform_2, window_bounds = array<i64: 40, 784>}]} {
    %c0 = arith.constant 0 : index
    %c0_0 = arith.constant 0 : index
    %0 = vector.load %arg2[%c0, %c0_0] : memref<40x784xf32, #tpu.memory_space<vmem>>, vector<40x784xf32>
    %c0_1 = arith.constant 0 : index
    %c0_2 = arith.constant 0 : index
    %1 = vector.load %arg1[%c0_1, %c0_2] : memref<40x1xf32, #tpu.memory_space<vmem>>, vector<40x1xf32>
    %2 = vector.broadcast %1 : vector<40x1xf32> to vector<40x784xf32>
    %3 = arith.mulf %0, %2 : vector<40x784xf32>
    %c0_3 = arith.constant 0 : index
    %c0_4 = arith.constant 0 : index
    %4 = vector.load %arg3[%c0_3, %c0_4] : memref<40x784xf32, #tpu.memory_space<vmem>>, vector<40x784xf32>
    tpu.vector_store %arg3[%c0_3, %c0_4], %3 {strides = array<i32>} : memref<40x784xf32, #tpu.memory_space<vmem>>, vector<40x784xf32>,
    return
  }
  func.func @transform_0(%arg0: i32) -> (i32, i32) {
    %c0_i32 = arith.constant 0 : i32
    %c0_i32_0 = arith.constant 0 : i32
    return %arg0, %c0_i32 : i32, i32
  }
  func.func @transform_1(%arg0: i32) -> (i32, i32) {
    %c0_i32 = arith.constant 0 : i32
    %c0_i32_0 = arith.constant 0 : i32
    return %arg0, %c0_i32 : i32, i32
  }
  func.func @transform_2(%arg0: i32) -> (i32, i32) {
    %c0_i32 = arith.constant 0 : i32
    %c0_i32_0 = arith.constant 0 : i32
    return %arg0, %c0_i32 : i32, i32
  }
}

</mosaic_0001>

<bundles_post_ra>
// kernel: tpu_custom_call.1
= control target key start
LH: loop header
LB: loop body
LE: loop exit
PB: predicated region body
PF: predicated region fallthrough
CT: control target
= control target key end

     0   :  { %s426_s9 = smov 0   ;;  %s529_s0 = inlined_call_operand.vmem [shape: f32[120,1], index: 0, kind: input, shape index: {}]   ;;  %s530_s1 = inlined_call_operand.vmem [shape: f32[120,784], index: 1, kind: input, shape index: {}]   ;;  %s531_s2 = inlined_call_operand.vmem [shape: f32[120,784], index: 2, kind: output, shape index: {}]  }
   0x1 LB: > { %s380_s10 = sadd.s32 4294967295, %s408_s9   ;;  %p384_p0 = scmp.ge.s32.totalorder %s408_s9, 1  ;;  %s408_s9 = sphi %s426_s9, %s12_s9  }
   0x2   : > { %p125_p1 = scmp.lt.s32.totalorder %s408_s9, 4 }
   0x4   : > { %p126_p2 = pnand %p384_p0, %p125_p1 }
   0x5   : > { %s154_s11 = smul.u32 (!%p126_p2), 5, %s380_s10  ;;  %v410_v0 = vmov (!%p126_p2), 0   ;;  %vm280_vm0 = vcmask (!%p126_p2), 130048  }
   0x6   : > { %129 = sbr.rel (%p126_p2) target bundleno = 165 (0xa5), region = 28  ;;  %401 = vset.pattern.permute.xlu1 (!%p126_p2), %v410_v0  ;;  %400 = vset.pattern.permute.xlu0 (!%p126_p2), %v410_v0 }
   0x7   : > { %p155_p3 = scmp.lt.s32.totalorder (!%p126_p2), %s154_s11, 14 }
   0xd   : > { %s533_s11 = smov (!%p155_p3, %s154_s11), 14 }
   0xe   : > { %s385_s12 = sshll.u32 %s533_s11, 3  ;;  %s390_s16 = smul.u32 56, %s533_s11 }
   0xf   : > { %s158_s15 = scalar_lea.vmem %s529_s0, %s385_s12 }
  0x10   : > { %v211_v1 = vld [vmem:[%s158_s15 + $0x10] sm:$0xff]  ;;  %v209_v2 = vld [vmem:[%s158_s15] sm:$0xff]  ;;  %v212_v3 = vld [vmem:[%s158_s15 + $0x18] sm:$0xff]  ;;  %s444_s19 = scalar_lea.vmem %s530_s1, %s390_s16  ;;  %s463_s22 = scalar_lea.vmem %s531_s2, %s390_s16 }
  0x11   : > { %226 = vperm.xlu1 %401, %v211_v1   ;;  %216 = vperm.xlu0 %400, %v209_v2   ;;  %v210_v4 = vld [vmem:[%s158_s15 + $0x8] sm:$0xff]  ;;  %v213_v5 = vld [vmem:[%s158_s15 + $0x20] sm:$0xff]  ;;  %v188_v6 = vld [vmem:[%s444_s19 + $0x70] sm:$0xff] }
  0x12   : > { %v189_v7 = vld [vmem:[%s444_s19 + $0x78] sm:$0xff]  ;;  %v190_v8 = vld [vmem:[%s444_s19 + $0x80] sm:$0xff]  ;;  %v191_v9 = vld [vmem:[%s444_s19 + $0x88] sm:$0xff] }
  0x13   : > { %v192_v10 = vld [vmem:[%s444_s19 + $0x90] sm:$0xff]  ;;  %v193_v11 = vld [vmem:[%s444_s19 + $0x98] sm:$0xff]  ;;  %v194_v12 = vld [vmem:[%s444_s19 + $0xa0] sm:$0xff] }
  0x14   : > { %v174_v13 = vld [vmem:[%s444_s19] sm:$0xff]  ;;  %v175_v14 = vld [vmem:[%s444_s19 + $0x8] sm:$0xff]  ;;  %v176_v15 = vld [vmem:[%s444_s19 + $0x10] sm:$0xff] }
  0x15   : > { %231 = vperm.xlu1 %401, %v212_v3   ;;  %221 = vperm.xlu0 %400, %v210_v4   ;;  %v177_v16 = vld [vmem:[%s444_s19 + $0x18] sm:$0xff]  ;;  %v178_v18 = vld [vmem:[%s444_s19 + $0x20] sm:$0xff]  ;;  %v179_v19 = vld [vmem:[%s444_s19 + $0x28] sm:$0xff] }
  0x16   : > { %v180_v20 = vld [vmem:[%s444_s19 + $0x30] sm:$0xff]  ;;  %v195_v26 = vld [vmem:[%s444_s19 + $0xa8] sm:$0xff]  ;;  %v197_v28 = vld [vmem:[%s444_s19 + $0xb8] sm:$0xff] }
  0x17   : > { %v196_v27 = vld [vmem:[%s444_s19 + $0xb0] sm:$0xff]  ;;  %v198_v33 = vld [vmem:[%s444_s19 + $0xc0] sm:$0xff]  ;;  %v199_v34 = vld [vmem:[%s444_s19 + $0xc8] sm:$0xff] }
  0x18   : > { %v200_v35 = vld [vmem:[%s444_s19 + $0xd0] sm:$0xff]  ;;  %v201_v40 = vld [vmem:[%s444_s19 + $0xd8] sm:$0xff]  ;;  %v182_v42 = vld [vmem:[%s444_s19 + $0x40] sm:$0xff] }
  0x19   : > { %236 = vperm.xlu0 %400, %v213_v5   ;;  %v181_v41 = vld [vmem:[%s444_s19 + $0x38] sm:$0xff]  ;;  %v183_v46 = vld [vmem:[%s444_s19 + $0x48] sm:$0xff]  ;;  %v184_v47 = vld [vmem:[%s444_s19 + $0x50] sm:$0xff] }
  0x1a   : > { %v185_v48 = vld [vmem:[%s444_s19 + $0x58] sm:$0xff]  ;;  %v186_v54 = vld [vmem:[%s444_s19 + $0x60] sm:$0xff]  ;;  %v187_v55 = vld [vmem:[%s444_s19 + $0x68] sm:$0xff] }
  0x1b   : > { %v202_v56 = vld [vmem:[%s444_s19 + $0xe0] sm:$0xff]  ;;  %v203_v61 = vld [vmem:[%s444_s19 + $0xe8] sm:$0xff]  ;;  %v204_v62 = vld [vmem:[%s444_s19 + $0xf0] sm:$0xff] }
  0x1c   : > { %v205_v63 = vld [vmem:[%s444_s19 + $0xf8] sm:$0xff]  ;;  %v206_v4 = vld [vmem:[%s444_s19 + $0x100] sm:$0xff]  ;;  %v207_v5 = vld [vmem:[%s444_s19 + $0x108] sm:$0xff] }
  0x90   : > { %v227_v17 = vpop.permute.xlu1 %226  ;;  %v217_v21 = vpop.permute.xlu0 %216 }
  0x91   : > { %v253_v22 = vmul.f32 %v227_v17, %v188_v6  ;;  %v254_v23 = vmul.f32 %v227_v17, %v189_v7  ;;  %v255_v24 = vmul.f32 %v227_v17, %v190_v8  ;;  %v256_v25 = vmul.f32 %v227_v17, %v191_v9  ;;  %v208_v6 = vld [vmem:[%s444_s19 + $0x110] sm:$0xff] }
  0x92   : > { %v257_v29 = vmul.f32 %v227_v17, %v192_v10  ;;  %v258_v30 = vmul.f32 %v227_v17, %v193_v11  ;;  %v259_v31 = vmul.f32 %v227_v17, %v194_v12  ;;  %v239_v32 = vmul.f32 %v217_v21, %v174_v13 }
  0x93   : > { %289 = vst [vmem:[%s463_s22 + $0x70] sm:$0xff] %v253_v22  ;;  %290 = vst [vmem:[%s463_s22 + $0x78] sm:$0xff] %v254_v23  ;;  %v240_v36 = vmul.f32 %v217_v21, %v175_v14  ;;  %v241_v37 = vmul.f32 %v217_v21, %v176_v15  ;;  %v242_v38 = vmul.f32 %v217_v21, %v177_v16 }
  0x94   : > { %291 = vst [vmem:[%s463_s22 + $0x80] sm:$0xff] %v255_v24  ;;  %292 = vst [vmem:[%s463_s22 + $0x88] sm:$0xff] %v256_v25  ;;  %v243_v39 = vmul.f32 %v217_v21, %v178_v18  ;;  %v244_v43 = vmul.f32 %v217_v21, %v179_v19  ;;  %v245_v44 = vmul.f32 %v217_v21, %v180_v20  ;;  %v232_v45 = vpop.permute.xlu1 %231  ;;  %v222_v49 = vpop.permute.xlu0 %221 }
  0x95   : > { %293 = vst [vmem:[%s463_s22 + $0x90] sm:$0xff] %v257_v29  ;;  %294 = vst [vmem:[%s463_s22 + $0x98] sm:$0xff] %v258_v30  ;;  %v260_v50 = vmul.f32 %v232_v45, %v195_v26  ;;  %v261_v51 = vmul.f32 %v232_v45, %v196_v27  ;;  %v262_v52 = vmul.f32 %v232_v45, %v197_v28 }
  0x96   : > { %295 = vst.msk [vmem:[%s463_s22 + $0xa0] sm:$0xff] %vm280_vm0, %v259_v31  ;;  %274 = vst [vmem:[%s463_s22] sm:$0xff] %v239_v32  ;;  %v263_v53 = vmul.f32 %v232_v45, %v198_v33  ;;  %v264_v57 = vmul.f32 %v232_v45, %v199_v34  ;;  %v265_v58 = vmul.f32 %v232_v45, %v200_v35 }
  0x97   : > { %275 = vst [vmem:[%s463_s22 + $0x8] sm:$0xff] %v240_v36  ;;  %276 = vst [vmem:[%s463_s22 + $0x10] sm:$0xff] %v241_v37  ;;  %v266_v59 = vmul.f32 %v232_v45, %v201_v40  ;;  %v246_v60 = vmul.f32 %v222_v49, %v181_v41  ;;  %v247_v0 = vmul.f32 %v222_v49, %v182_v42 }
  0x98   : > { %277 = vst [vmem:[%s463_s22 + $0x18] sm:$0xff] %v242_v38  ;;  %278 = vst [vmem:[%s463_s22 + $0x20] sm:$0xff] %v243_v39  ;;  %v248_v1 = vmul.f32 %v222_v49, %v183_v46  ;;  %v249_v2 = vmul.f32 %v222_v49, %v184_v47  ;;  %v250_v3 = vmul.f32 %v222_v49, %v185_v48  ;;  %v237_v9 = vpop.permute.xlu0 %236 }
  0x99   : > { %279 = vst [vmem:[%s463_s22 + $0x28] sm:$0xff] %v244_v43  ;;  %281 = vst.msk [vmem:[%s463_s22 + $0x30] sm:$0xff] %vm280_vm0, %v245_v44  ;;  %v251_v7 = vmul.f32 %v222_v49, %v186_v54  ;;  %v252_v8 = vmul.f32 %v222_v49, %v187_v55  ;;  %v267_v10 = vmul.f32 %v237_v9, %v202_v56 }
  0x9a   : > { %296 = vst [vmem:[%s463_s22 + $0xa8] sm:$0xff] %v260_v50  ;;  %297 = vst [vmem:[%s463_s22 + $0xb0] sm:$0xff] %v261_v51  ;;  %v268_v11 = vmul.f32 %v237_v9, %v203_v61  ;;  %v269_v12 = vmul.f32 %v237_v9, %v204_v62  ;;  %v270_v13 = vmul.f32 %v237_v9, %v205_v63 }
  0x9b   : > { %298 = vst [vmem:[%s463_s22 + $0xb8] sm:$0xff] %v262_v52  ;;  %299 = vst [vmem:[%s463_s22 + $0xc0] sm:$0xff] %v263_v53  ;;  %v271_v14 = vmul.f32 %v237_v9, %v206_v4  ;;  %v272_v15 = vmul.f32 %v237_v9, %v207_v5  ;;  %v273_v16 = vmul.f32 %v237_v9, %v208_v6 }
  0x9c   : > { %300 = vst [vmem:[%s463_s22 + $0xc8] sm:$0xff] %v264_v57  ;;  %301 = vst [vmem:[%s463_s22 + $0xd0] sm:$0xff] %v265_v58 }
  0x9d   : > { %302 = vst.msk [vmem:[%s463_s22 + $0xd8] sm:$0xff] %vm280_vm0, %v266_v59  ;;  %282 = vst [vmem:[%s463_s22 + $0x38] sm:$0xff] %v246_v60 }
  0x9e   : > { %283 = vst [vmem:[%s463_s22 + $0x40] sm:$0xff] %v247_v0  ;;  %284 = vst [vmem:[%s463_s22 + $0x48] sm:$0xff] %v248_v1 }
  0x9f   : > { %285 = vst [vmem:[%s463_s22 + $0x50] sm:$0xff] %v249_v2  ;;  %286 = vst [vmem:[%s463_s22 + $0x58] sm:$0xff] %v250_v3 }
  0xa0   : > { %287 = vst [vmem:[%s463_s22 + $0x60] sm:$0xff] %v251_v7  ;;  %288 = vst.msk [vmem:[%s463_s22 + $0x68] sm:$0xff] %vm280_vm0, %v252_v8 }
  0xa1   : > { %303 = vst [vmem:[%s463_s22 + $0xe0] sm:$0xff] %v267_v10  ;;  %304 = vst [vmem:[%s463_s22 + $0xe8] sm:$0xff] %v268_v11 }
  0xa2   : > { %305 = vst [vmem:[%s463_s22 + $0xf0] sm:$0xff] %v269_v12  ;;  %306 = vst [vmem:[%s463_s22 + $0xf8] sm:$0xff] %v270_v13 }
  0xa3   : > { %307 = vst [vmem:[%s463_s22 + $0x100] sm:$0xff] %v271_v14  ;;  %308 = vst [vmem:[%s463_s22 + $0x108] sm:$0xff] %v272_v15 }
  0xa4   : > { %309 = vst.msk [vmem:[%s463_s22 + $0x110] sm:$0xff] %vm280_vm0, %v273_v16 }
  0xa5 PF: > { %s12_s9 = sadd.s32 1, %s408_s9  }
  0xa6   : > { %p9_p4 = scmp.ge.s32.totalorder %s12_s9, 5  }
  0xa8   :  { %11 = sbr.rel (!%p9_p4) target bundleno = 1 (0x1), region = 61 }

</bundles_post_ra>
